<compile_context>
chip_gen: v6e
topology: v6e:2x2x1
jax: 0.10.0
libtpu: 0.0.40
codegen_flags: <defaults>
</compile_context>

<pallas_src>
import functools

import jax
import jax.numpy as jnp
from jax import lax
from jax.experimental import pallas as pl
from jax.experimental.pallas import tpu as pltpu


def _row_softmax(x):
    m = jnp.max(x, axis=1, keepdims=True)
    e = jnp.exp(x - m)
    return e / jnp.sum(e, axis=1, keepdims=True)


def gtransformer_kernel(adj_ref, h_ref, g1w_ref, g1b_ref, qkvw_ref, qkvb_ref,
                        pw_ref, pb_ref, out_ref, *, compute_dtype):
    H, N, _ = adj_ref.shape
    hid = g1b_ref.shape[-1]
    dt = compute_dtype

    h = h_ref[...].astype(dt)                                      # (N, F_in)

    # GraphConvolution "support" matmul fused across all heads:
    #   (N, F_in) @ (F_in, H*hid)  -- one wide, lane-dense MXU dot.
    support_all = jnp.dot(h, g1w_ref[...].astype(dt),
                          preferred_element_type=jnp.float32)      # (N, H*hid)

    acc = jnp.zeros((N, hid), jnp.float32)

    # Single grid step; static (unrolled) loop over heads so the scheduler can
    # overlap head i+1's matmuls with head i's epilogue.
    for i in range(H):
        adj = adj_ref[i]                                           # (N, N) f32
        support = support_all[:, i * hid:(i + 1) * hid]            # (N, hid)

        # x = relu(adj @ support + b)
        x = jnp.dot(adj.astype(dt), support.astype(dt),
                    preferred_element_type=jnp.float32) + g1b_ref[i]
        x = jnp.maximum(x, 0.0)

        # Fused Q|K|V projection: one (N, hid) @ (hid, 3*hid) dot.
        qkv = jnp.dot(x.astype(dt), qkvw_ref[i].astype(dt),
                      preferred_element_type=jnp.float32) + qkvb_ref[i]
        q = qkv[:, :hid]
        k = qkv[:, hid:2 * hid]
        v = qkv[:, 2 * hid:]

        # Q @ K^T via dot_general contracting dim 1 of both operands
        # (avoids materializing K.T).
        scores = lax.dot_general(q.astype(dt), k.astype(dt),
                                 (((1,), (1,)), ((), ())),
                                 preferred_element_type=jnp.float32)
        a_tilde = adj * scores
        attn = _row_softmax(a_tilde)

        # gcn_norm(attn) with self-loops: rows of `attn` sum to exactly 1, so
        # deg == 2 everywhere and D^-1/2 (attn+I) D^-1/2 == 0.5*(attn + I).
        # Hence gcn_norm(attn) @ V == 0.5*(attn @ V + V)  (numerically exact).
        av = jnp.dot(attn.astype(dt), v.astype(dt),
                     preferred_element_type=jnp.float32)
        x_tilde = jnp.maximum(0.5 * (av + v), 0.0)                 # (N, hid)

        # SemanticAttention: beta = softmax over a size-1 axis == 1.0 exactly,
        # so the head embeddings are summed (projection MLP elided; see
        # reference_forward for the full, un-simplified computation).
        acc = acc + x_tilde

    logits = jnp.dot(acc.astype(dt), pw_ref[...].astype(dt),
                     preferred_element_type=jnp.float32) + pb_ref[...]
    out_ref[...] = _row_softmax(logits).astype(out_ref.dtype)


def gtransformer_forward(adj, h, params, *, compute_dtype=jnp.float32):
    """adj: (H, N, N), h: (N, F_in).  compute_dtype=jnp.bfloat16 for v6e/v7x MXU."""
    H, N, _ = adj.shape
    F_in = h.shape[1]
    hid = params["g1b"].shape[-1]
    C = params["pw"].shape[1]

    # Host-side weight layout prep (pure re-packing, no extra runtime compute):
    #   - all heads' gcn1 weights -> one (F_in, H*hid) matrix
    #   - per-head Q|K|V weights / biases -> (H, hid, 3*hid) / (H, 1, 3*hid)
    g1w_cat = jnp.transpose(params["g1w"], (1, 0, 2)).reshape(F_in, H * hid)
    qkvw = jnp.concatenate([params["qw"], params["kw"], params["vw"]], axis=2)
    qkvb = jnp.concatenate([params["qb"], params["kb"], params["vb"]], axis=2)

    vmem = pl.BlockSpec(memory_space=pltpu.MemorySpace.VMEM)
    return pl.pallas_call(
        functools.partial(gtransformer_kernel, compute_dtype=compute_dtype),
        out_shape=jax.ShapeDtypeStruct((N, C), jnp.float32),
        in_specs=[vmem] * 8,
        out_specs=vmem,
        compiler_params=pltpu.CompilerParams(
            # explicit scoped-VMEM budget (safe on v5e's 16 MiB default too)
            vmem_limit_bytes=32 * 1024 * 1024),
    )(adj, h, g1w_cat, params["g1b"], qkvw, qkvb, params["pw"], params["pb"])


def reference_forward(adj, h, params):
    """Pure-JAX reference reproducing the PyTorch semantics (no simplifications)."""
    H = adj.shape[0]
    embs = []
    for i in range(H):
        a = adj[i]
        x = jnp.maximum(a @ (h @ params["g1w"][i]) + params["g1b"][i, 0], 0.0)
        q = x @ params["qw"][i] + params["qb"][i, 0]
        k = x @ params["kw"][i] + params["kb"][i, 0]
        v = x @ params["vw"][i] + params["vb"][i, 0]
        a_tilde = a * (q @ k.T)
        attn = jax.nn.softmax(a_tilde, axis=1)
        # TODO(synk): gcn_norm is not defined in the reference source; using the
        # PyG-standard symmetric normalization with self-loops.
        a_hat = attn + jnp.eye(a.shape[0], dtype=attn.dtype)
        deg = jnp.sum(a_hat, axis=1, keepdims=True)
        dinv = 1.0 / jnp.sqrt(deg)
        a_norm = dinv * a_hat * dinv.T
        embs.append(jnp.maximum(a_norm @ v, 0.0))
    z = jnp.stack(embs, axis=1)                                    # (N, H, hid)
    w = jnp.mean(jnp.tanh(z @ params["s1w"] + params["s1b"][0]) @ params["s2w"],
                 axis=0)                                           # (H, 1)
    beta = jax.nn.softmax(w, axis=1)                               # == 1 (size-1 axis)
    p2 = jnp.sum(beta[None] * z, axis=1)                           # (N, hid)
    return jax.nn.softmax(p2 @ params["pw"] + params["pb"][0], axis=1)


def make_params(key, num_heads, in_dim, hid_dim, out_dim, atten):
    ks = jax.random.split(key, 16)
    s = lambda k, shape, fan: (jax.random.normal(k, shape, jnp.float32) / jnp.sqrt(fan))
    return {
        "g1w": s(ks[0], (num_heads, in_dim, hid_dim), in_dim),
        "g1b": s(ks[1], (num_heads, 1, hid_dim), hid_dim),
        "qw":  s(ks[2], (num_heads, hid_dim, hid_dim), hid_dim),
        "qb":  s(ks[3], (num_heads, 1, hid_dim), hid_dim),
        "kw":  s(ks[4], (num_heads, hid_dim, hid_dim), hid_dim),
        "kb":  s(ks[5], (num_heads, 1, hid_dim), hid_dim),
        "vw":  s(ks[6], (num_heads, hid_dim, hid_dim), hid_dim),
        "vb":  s(ks[7], (num_heads, 1, hid_dim), hid_dim),
        "s1w": s(ks[8], (hid_dim, atten), hid_dim),
        "s1b": s(ks[9], (1, atten), atten),
        "s2w": s(ks[10], (atten, 1), atten),
        "pw":  s(ks[11], (hid_dim, out_dim), hid_dim),
        "pb":  s(ks[12], (1, out_dim), out_dim),
    }


if __name__ == "__main__":
    num_heads = 2
    N = 16          # nodes
    in_dim = 8
    hid_dim = 32
    out_dim = 4
    atten = 16      # SemanticAttention hidden size (args.atten)

    key = jax.random.PRNGKey(0)
    k_adj, k_h, k_p = jax.random.split(key, 3)

    # Dense adjacency per head (0/1 with self loops), node features.
    adj = (jax.random.uniform(k_adj, (num_heads, N, N)) < 0.3).astype(jnp.float32)
    eye = jnp.eye(N, dtype=jnp.float32)
    adj = jnp.clip(adj + eye[None], 0.0, 1.0)
    h = jax.random.normal(k_h, (N, in_dim), jnp.float32)

    params = make_params(k_p, num_heads, in_dim, hid_dim, out_dim, atten)

    ref = reference_forward(adj, h, params)

    # f32 path (all chips): must match the un-simplified reference tightly,
    # validating the algebraic simplifications (gcn_norm deg==2, beta==1, fusions).
    out = jax.block_until_ready(gtransformer_forward(adj, h, params))
    assert out.shape == (N, out_dim)
    assert jnp.allclose(out, ref, atol=1e-4, rtol=1e-4)

    # bf16 MXU-operand path (recommended on v6e / v7x); f32 accumulation, biases
    # and softmaxes stay f32 — checked against the f32 reference loosely.
    out_bf16 = jax.block_until_ready(
        gtransformer_forward(adj, h, params, compute_dtype=jnp.bfloat16))
    assert out_bf16.shape == (N, out_dim)
    assert jnp.allclose(out_bf16, ref, atol=1e-1, rtol=1e-1)

    print("KERNEL_OK")
</pallas_src>

<mosaic_0001>
module attributes {stable_mosaic.version = 11 : i64} {
  func.func @gtransformer_kernel(%arg0: memref<2x16x16xf32, #tpu.memory_space<vmem>>, %arg1: memref<16x8xf32, #tpu.memory_space<vmem>>, %arg2: memref<8x64xf32, #tpu.memory_space<vmem>>, %arg3: memref<2x1x32xf32, #tpu.memory_space<vmem>>, %arg4: memref<2x32x96xf32, #tpu.memory_space<vmem>>, %arg5: memref<2x1x96xf32, #tpu.memory_space<vmem>>, %arg6: memref<32x4xf32, #tpu.memory_space<vmem>>, %arg7: memref<1x4xf32, #tpu.memory_space<vmem>>, %arg8: memref<16x4xf32, #tpu.memory_space<vmem>>) attributes {dimension_semantics = [], scalar_prefetch = 0 : i64, scratch_operands = 0 : i64, tpu.core_type = #tpu.core_type<tc>} {
    %c0 = arith.constant 0 : index
    %c0_0 = arith.constant 0 : index
    %0 = vector.load %arg1[%c0, %c0_0] : memref<16x8xf32, #tpu.memory_space<vmem>>, vector<16x8xf32>
    %c0_1 = arith.constant 0 : index
    %c0_2 = arith.constant 0 : index
    %1 = vector.load %arg2[%c0_1, %c0_2] : memref<8x64xf32, #tpu.memory_space<vmem>>, vector<8x64xf32>
    %cst = arith.constant dense<0.000000e+00> : vector<16x64xf32>
    %2 = tpu.matmul %0, %1, %cst {dimension_numbers = #tpu.dot_dimension_numbers<[1], [0], [0], [1], [0, 0, 1, 1], [], []>} : vector<16x8xf32>, vector<8x64xf32>, vector<16x64xf32> -> vector<16x64xf32>
    %cst_3 = arith.constant 0.000000e+00 : f32
    %3 = vector.broadcast %cst_3 : f32 to vector<16x32xf32>
    %c0_4 = arith.constant 0 : index
    %c0_5 = arith.constant 0 : index
    %c0_6 = arith.constant 0 : index
    %4 = vector.load %arg0[%c0_4, %c0_5, %c0_6] : memref<2x16x16xf32, #tpu.memory_space<vmem>>, vector<1x16x16xf32>
    %5 = vector.shape_cast %4 : vector<1x16x16xf32> to vector<16x16xf32>
    %6 = vector.extract_strided_slice %2 {offsets = [0, 0], sizes = [16, 32], strides = [1, 1]} : vector<16x64xf32> to vector<16x32xf32>
    %cst_7 = arith.constant dense<0.000000e+00> : vector<16x32xf32>
    %7 = tpu.matmul %5, %6, %cst_7 {dimension_numbers = #tpu.dot_dimension_numbers<[1], [0], [0], [1], [0, 0, 1, 1], [], []>} : vector<16x16xf32>, vector<16x32xf32>, vector<16x32xf32> -> vector<16x32xf32>
    %c0_8 = arith.constant 0 : index
    %c0_9 = arith.constant 0 : index
    %c0_10 = arith.constant 0 : index
    %8 = vector.load %arg3[%c0_8, %c0_9, %c0_10] : memref<2x1x32xf32, #tpu.memory_space<vmem>>, vector<1x1x32xf32>
    %9 = vector.shape_cast %8 : vector<1x1x32xf32> to vector<1x32xf32>
    %10 = vector.broadcast %9 : vector<1x32xf32> to vector<16x32xf32>
    %11 = arith.addf %7, %10 : vector<16x32xf32>
    %cst_11 = arith.constant 0.000000e+00 : f32
    %12 = vector.broadcast %cst_11 : f32 to vector<16x32xf32>
    %13 = arith.maximumf %11, %12 : vector<16x32xf32>
    %c0_12 = arith.constant 0 : index
    %c0_13 = arith.constant 0 : index
    %c0_14 = arith.constant 0 : index
    %14 = vector.load %arg4[%c0_12, %c0_13, %c0_14] : memref<2x32x96xf32, #tpu.memory_space<vmem>>, vector<1x32x96xf32>
    %15 = vector.shape_cast %14 : vector<1x32x96xf32> to vector<32x96xf32>
    %cst_15 = arith.constant dense<0.000000e+00> : vector<16x96xf32>
    %16 = tpu.matmul %13, %15, %cst_15 {dimension_numbers = #tpu.dot_dimension_numbers<[1], [0], [0], [1], [0, 0, 1, 1], [], []>} : vector<16x32xf32>, vector<32x96xf32>, vector<16x96xf32> -> vector<16x96xf32>
    %c0_16 = arith.constant 0 : index
    %c0_17 = arith.constant 0 : index
    %c0_18 = arith.constant 0 : index
    %17 = vector.load %arg5[%c0_16, %c0_17, %c0_18] : memref<2x1x96xf32, #tpu.memory_space<vmem>>, vector<1x1x96xf32>
    %18 = vector.shape_cast %17 : vector<1x1x96xf32> to vector<1x96xf32>
    %19 = vector.broadcast %18 : vector<1x96xf32> to vector<16x96xf32>
    %20 = arith.addf %16, %19 : vector<16x96xf32>
    %21 = vector.extract_strided_slice %20 {offsets = [0, 0], sizes = [16, 32], strides = [1, 1]} : vector<16x96xf32> to vector<16x32xf32>
    %22 = vector.extract_strided_slice %20 {offsets = [0, 32], sizes = [16, 32], strides = [1, 1]} : vector<16x96xf32> to vector<16x32xf32>
    %23 = vector.extract_strided_slice %20 {offsets = [0, 64], sizes = [16, 32], strides = [1, 1]} : vector<16x96xf32> to vector<16x32xf32>
    %cst_19 = arith.constant dense<0.000000e+00> : vector<16x16xf32>
    %24 = tpu.matmul %21, %22, %cst_19 {dimension_numbers = #tpu.dot_dimension_numbers<[1], [1], [0], [0], [0, 0, 1, 0], [], []>} : vector<16x32xf32>, vector<16x32xf32>, vector<16x16xf32> -> vector<16x16xf32>
    %25 = arith.mulf %5, %24 : vector<16x16xf32>
    %cst_20 = arith.constant dense<0xFF800000> : vector<16xf32>
    %26 = vector.multi_reduction <maximumf>, %25, %cst_20 [1] : vector<16x16xf32> to vector<16xf32>
    %27 = vector.shape_cast %26 : vector<16xf32> to vector<16x1xf32>
    %28 = vector.broadcast %27 : vector<16x1xf32> to vector<16x16xf32>
    %29 = arith.subf %25, %28 : vector<16x16xf32>
    %30 = math.exp %29 : vector<16x16xf32>
    %cst_21 = arith.constant dense<0.000000e+00> : vector<16xf32>
    %31 = vector.multi_reduction <add>, %30, %cst_21 [1] : vector<16x16xf32> to vector<16xf32>
    %32 = vector.shape_cast %31 : vector<16xf32> to vector<16x1xf32>
    %33 = vector.broadcast %32 : vector<16x1xf32> to vector<16x16xf32>
    %34 = arith.divf %30, %33 : vector<16x16xf32>
    %cst_22 = arith.constant dense<0.000000e+00> : vector<16x32xf32>
    %35 = tpu.matmul %34, %23, %cst_22 {dimension_numbers = #tpu.dot_dimension_numbers<[1], [0], [0], [1], [0, 0, 1, 1], [], []>} : vector<16x16xf32>, vector<16x32xf32>, vector<16x32xf32> -> vector<16x32xf32>
    %36 = arith.addf %35, %23 : vector<16x32xf32>
    %cst_23 = arith.constant 5.000000e-01 : f32
    %37 = vector.broadcast %cst_23 : f32 to vector<16x32xf32>
    %38 = arith.mulf %37, %36 : vector<16x32xf32>
    %cst_24 = arith.constant 0.000000e+00 : f32
    %39 = vector.broadcast %cst_24 : f32 to vector<16x32xf32>
    %40 = arith.maximumf %38, %39 : vector<16x32xf32>
    %41 = arith.addf %3, %40 : vector<16x32xf32>
    %c1 = arith.constant 1 : index
    %c0_25 = arith.constant 0 : index
    %c0_26 = arith.constant 0 : index
    %42 = vector.load %arg0[%c1, %c0_25, %c0_26] : memref<2x16x16xf32, #tpu.memory_space<vmem>>, vector<1x16x16xf32>
    %43 = vector.shape_cast %42 : vector<1x16x16xf32> to vector<16x16xf32>
    %44 = vector.extract_strided_slice %2 {offsets = [0, 32], sizes = [16, 32], strides = [1, 1]} : vector<16x64xf32> to vector<16x32xf32>
    %cst_27 = arith.constant dense<0.000000e+00> : vector<16x32xf32>
    %45 = tpu.matmul %43, %44, %cst_27 {dimension_numbers = #tpu.dot_dimension_numbers<[1], [0], [0], [1], [0, 0, 1, 1], [], []>} : vector<16x16xf32>, vector<16x32xf32>, vector<16x32xf32> -> vector<16x32xf32>
    %c1_28 = arith.constant 1 : index
    %c0_29 = arith.constant 0 : index
    %c0_30 = arith.constant 0 : index
    %46 = vector.load %arg3[%c1_28, %c0_29, %c0_30] : memref<2x1x32xf32, #tpu.memory_space<vmem>>, vector<1x1x32xf32>
    %47 = vector.shape_cast %46 : vector<1x1x32xf32> to vector<1x32xf32>
    %48 = vector.broadcast %47 : vector<1x32xf32> to vector<16x32xf32>
    %49 = arith.addf %45, %48 : vector<16x32xf32>
    %cst_31 = arith.constant 0.000000e+00 : f32
    %50 = vector.broadcast %cst_31 : f32 to vector<16x32xf32>
    %51 = arith.maximumf %49, %50 : vector<16x32xf32>
    %c1_32 = arith.constant 1 : index
    %c0_33 = arith.constant 0 : index
    %c0_34 = arith.constant 0 : index
    %52 = vector.load %arg4[%c1_32, %c0_33, %c0_34] : memref<2x32x96xf32, #tpu.memory_space<vmem>>, vector<1x32x96xf32>
    %53 = vector.shape_cast %52 : vector<1x32x96xf32> to vector<32x96xf32>
    %cst_35 = arith.constant dense<0.000000e+00> : vector<16x96xf32>
    %54 = tpu.matmul %51, %53, %cst_35 {dimension_numbers = #tpu.dot_dimension_numbers<[1], [0], [0], [1], [0, 0, 1, 1], [], []>} : vector<16x32xf32>, vector<32x96xf32>, vector<16x96xf32> -> vector<16x96xf32>
    %c1_36 = arith.constant 1 : index
    %c0_37 = arith.constant 0 : index
    %c0_38 = arith.constant 0 : index
    %55 = vector.load %arg5[%c1_36, %c0_37, %c0_38] : memref<2x1x96xf32, #tpu.memory_space<vmem>>, vector<1x1x96xf32>
    %56 = vector.shape_cast %55 : vector<1x1x96xf32> to vector<1x96xf32>
    %57 = vector.broadcast %56 : vector<1x96xf32> to vector<16x96xf32>
    %58 = arith.addf %54, %57 : vector<16x96xf32>
    %59 = vector.extract_strided_slice %58 {offsets = [0, 0], sizes = [16, 32], strides = [1, 1]} : vector<16x96xf32> to vector<16x32xf32>
    %60 = vector.extract_strided_slice %58 {offsets = [0, 32], sizes = [16, 32], strides = [1, 1]} : vector<16x96xf32> to vector<16x32xf32>
    %61 = vector.extract_strided_slice %58 {offsets = [0, 64], sizes = [16, 32], strides = [1, 1]} : vector<16x96xf32> to vector<16x32xf32>
    %cst_39 = arith.constant dense<0.000000e+00> : vector<16x16xf32>
    %62 = tpu.matmul %59, %60, %cst_39 {dimension_numbers = #tpu.dot_dimension_numbers<[1], [1], [0], [0], [0, 0, 1, 0], [], []>} : vector<16x32xf32>, vector<16x32xf32>, vector<16x16xf32> -> vector<16x16xf32>
    %63 = arith.mulf %43, %62 : vector<16x16xf32>
    %cst_40 = arith.constant dense<0xFF800000> : vector<16xf32>
    %64 = vector.multi_reduction <maximumf>, %63, %cst_40 [1] : vector<16x16xf32> to vector<16xf32>
    %65 = vector.shape_cast %64 : vector<16xf32> to vector<16x1xf32>
    %66 = vector.broadcast %65 : vector<16x1xf32> to vector<16x16xf32>
    %67 = arith.subf %63, %66 : vector<16x16xf32>
    %68 = math.exp %67 : vector<16x16xf32>
    %cst_41 = arith.constant dense<0.000000e+00> : vector<16xf32>
    %69 = vector.multi_reduction <add>, %68, %cst_41 [1] : vector<16x16xf32> to vector<16xf32>
    %70 = vector.shape_cast %69 : vector<16xf32> to vector<16x1xf32>
    %71 = vector.broadcast %70 : vector<16x1xf32> to vector<16x16xf32>
    %72 = arith.divf %68, %71 : vector<16x16xf32>
    %cst_42 = arith.constant dense<0.000000e+00> : vector<16x32xf32>
    %73 = tpu.matmul %72, %61, %cst_42 {dimension_numbers = #tpu.dot_dimension_numbers<[1], [0], [0], [1], [0, 0, 1, 1], [], []>} : vector<16x16xf32>, vector<16x32xf32>, vector<16x32xf32> -> vector<16x32xf32>
    %74 = arith.addf %73, %61 : vector<16x32xf32>
    %cst_43 = arith.constant 5.000000e-01 : f32
    %75 = vector.broadcast %cst_43 : f32 to vector<16x32xf32>
    %76 = arith.mulf %75, %74 : vector<16x32xf32>
    %cst_44 = arith.constant 0.000000e+00 : f32
    %77 = vector.broadcast %cst_44 : f32 to vector<16x32xf32>
    %78 = arith.maximumf %76, %77 : vector<16x32xf32>
    %79 = arith.addf %41, %78 : vector<16x32xf32>
    %c0_45 = arith.constant 0 : index
    %c0_46 = arith.constant 0 : index
    %80 = vector.load %arg6[%c0_45, %c0_46] : memref<32x4xf32, #tpu.memory_space<vmem>>, vector<32x4xf32>
    %cst_47 = arith.constant dense<0.000000e+00> : vector<16x4xf32>
    %81 = tpu.matmul %79, %80, %cst_47 {dimension_numbers = #tpu.dot_dimension_numbers<[1], [0], [0], [1], [0, 0, 1, 1], [], []>} : vector<16x32xf32>, vector<32x4xf32>, vector<16x4xf32> -> vector<16x4xf32>
    %c0_48 = arith.constant 0 : index
    %c0_49 = arith.constant 0 : index
    %82 = vector.load %arg7[%c0_48, %c0_49] : memref<1x4xf32, #tpu.memory_space<vmem>>, vector<1x4xf32>
    %83 = vector.broadcast %82 : vector<1x4xf32> to vector<16x4xf32>
    %84 = arith.addf %81, %83 : vector<16x4xf32>
    %cst_50 = arith.constant dense<0xFF800000> : vector<16xf32>
    %85 = vector.multi_reduction <maximumf>, %84, %cst_50 [1] : vector<16x4xf32> to vector<16xf32>
    %86 = vector.shape_cast %85 : vector<16xf32> to vector<16x1xf32>
    %87 = vector.broadcast %86 : vector<16x1xf32> to vector<16x4xf32>
    %88 = arith.subf %84, %87 : vector<16x4xf32>
    %89 = math.exp %88 : vector<16x4xf32>
    %cst_51 = arith.constant dense<0.000000e+00> : vector<16xf32>
    %90 = vector.multi_reduction <add>, %89, %cst_51 [1] : vector<16x4xf32> to vector<16xf32>
    %91 = vector.shape_cast %90 : vector<16xf32> to vector<16x1xf32>
    %92 = vector.broadcast %91 : vector<16x1xf32> to vector<16x4xf32>
    %93 = arith.divf %89, %92 : vector<16x4xf32>
    %c0_52 = arith.constant 0 : index
    %c0_53 = arith.constant 0 : index
    %94 = vector.load %arg8[%c0_52, %c0_53] : memref<16x4xf32, #tpu.memory_space<vmem>>, vector<16x4xf32>
    tpu.vector_store %arg8[%c0_52, %c0_53], %93 {strides = array<i32>} : memref<16x4xf32, #tpu.memory_space<vmem>>, vector<16x4xf32>,
    return
  }
}

</mosaic_0001>

<bundles_post_ra>
// kernel: tpu_custom_call.1
= control target key start
LH: loop header
LB: loop body
LE: loop exit
PB: predicated region body
PF: predicated region fallthrough
CT: control target
= control target key end

     0   :  { %13 = vsyncpa [#allocation3], 0  ;;  %s1559_s0 = inlined_call_operand.hbm [shape: f32[2,16,16], index: 0, kind: input, shape index: {}]   ;;  %s1560_s1 = inlined_call_operand.vmem [shape: f32[16,8], index: 1, kind: input, shape index: {}]   ;;  %s1561_s2 = inlined_call_operand.hbm [shape: f32[8,64], index: 2, kind: input, shape index: {}]   ;;  %s1562_s3 = inlined_call_operand.hbm [shape: f32[2,1,32], index: 3, kind: input, shape index: {}]   ;;  %s1563_s4 = inlined_call_operand.vmem [shape: f32[2,32,96], index: 4, kind: input, shape index: {}]   ;;  %s1564_s5 = inlined_call_operand.hbm [shape: f32[2,1,96], index: 5, kind: input, shape index: {}]   ;;  %s1565_s6 = inlined_call_operand.vmem [shape: f32[32,4], index: 6, kind: input, shape index: {}]   ;;  %s1566_s7 = inlined_call_operand.vmem [shape: f32[1,4], index: 7, kind: input, shape index: {}]   ;;  %s1567_s8 = inlined_call_operand.vmem [shape: f32[16,4], index: 8, kind: output, shape index: {}]  }
   0x1   :  { %14 = vsyncpa [#allocation5], 0 }
   0x2   :  { %15 = vsyncpa [#allocation8], 0  ;;  %s1363_s27 = smov [#allocation4]   ;;  %s1364_s29 = smov [#allocation2]  }
   0x3   :  { %s36_s28 = sshll.u32 %s1363_s27, 4  ;;  %s21_s30 = sshll.u32 %s1364_s29, 4  ;;  %s37_s28 = int_to_ptr.vmem [resolvable:$true] %s36_s28  ;;  %s22_s30 = int_to_ptr.vmem [resolvable:$true] %s21_s30 }
   0x4   :  { %s1285_s9 = scalar_lea.vmem %s37_s28, 128  ;;  %p1290_p1 = scmp.lt.s32.totalorder %s37_s28, %s37_s28 }
   0x5   :  { %p1286_p0 = scmp.ne.s32.totalorder %s37_s28, %s1285_s9  ;;  %p1291_p2 = scmp.lt.s32.totalorder %s1285_s9, %s1285_s9 }
   0x7   :  { %p1292_p3 = por %p1291_p2, %p1290_p1 }
   0x9   :  { %p1293_p4 = pnand %p1292_p3, %p1286_p0 }
   0xb   :  { %1296 = shalt.err (!%p1293_p4)
}
   0xc   :  { %39 = dma.hbm_to_vmem [thread:$0]  %s1561_s2, 128, %s37_s28, [#allocation5]  }
   0xd   :  { %s1305_s12 = scalar_lea.vmem %s22_s30, 512  ;;  %p1310_p6 = scmp.lt.s32.totalorder %s22_s30, %s22_s30 }
   0xe   :  { %p1306_p5 = scmp.ne.s32.totalorder %s22_s30, %s1305_s12  ;;  %p1311_p7 = scmp.lt.s32.totalorder %s1305_s12, %s1305_s12 }
  0x10   :  { %p1312_p8 = por %p1311_p7, %p1310_p6 }
  0x12   :  { %p1313_p9 = pnand %p1312_p8, %p1306_p5 }
  0x14   :  { %1316 = shalt.err (!%p1313_p9)
}
  0x15   :  { %s1365_s13 = smov 128   ;;  %s1366_s14 = smov 8  }
  0x16   :  { %27 = dma.hbm_to_vmem [thread:$0]  %s1559_s0, 512, %s22_s30, [#allocation3], %s1365_s13, %s1365_s13, %s1366_s14  }
  0x17   :  { %s1367_s17 = smov [#allocation6]  }
  0x18   :  { %s45_s18 = sshll.u32 %s1367_s17, 4  ;;  %s46_s18 = int_to_ptr.vmem [resolvable:$true] %s45_s18 }
  0x19   :  { %s1325_s19 = scalar_lea.vmem %s46_s18, 32  ;;  %p1330_p11 = scmp.lt.s32.totalorder %s46_s18, %s46_s18 }
  0x1a   :  { %p1326_p10 = scmp.ne.s32.totalorder %s46_s18, %s1325_s19  ;;  %p1331_p12 = scmp.lt.s32.totalorder %s1325_s19, %s1325_s19 }
  0x1c   :  { %p1332_p13 = por %p1331_p12, %p1330_p11 }
  0x1e   :  { %p1333_p0 = pnand %p1332_p13, %p1326_p10 }
  0x20   :  { %1336 = shalt.err (!%p1333_p0)
}
  0x21   :  { %s1368_s2 = smov 16   ;;  %s1369_s20 = smov 1  }
  0x22   :  { %51 = dma.hbm_to_vmem [thread:$0]  %s1562_s3, 32, %s46_s18, [#allocation5], %s1368_s2, %s1368_s2, %s1369_s20  }
  0x23   :  { %s1370_s23 = smov [#allocation7]  }
  0x24   :  { %s59_s24 = sshll.u32 %s1370_s23, 4  ;;  %s60_s24 = int_to_ptr.vmem [resolvable:$true] %s59_s24 }
  0x25   :  { %s1345_s0 = scalar_lea.vmem %s60_s24, 32  ;;  %p1350_p2 = scmp.lt.s32.totalorder %s60_s24, %s60_s24 }
  0x26   :  { %p1346_p1 = scmp.ne.s32.totalorder %s60_s24, %s1345_s0  ;;  %p1351_p3 = scmp.lt.s32.totalorder %s1345_s0, %s1345_s0 }
  0x28   :  { %p1352_p4 = por %p1351_p3, %p1350_p2 }
  0x2a   :  { %p1353_p5 = pnand %p1352_p4, %p1346_p1 }
  0x2c   :  { %1356 = shalt.err (!%p1353_p5)
}
  0x2d   :  { %65 = dma.hbm_to_vmem [thread:$0]  %s1564_s5, 32, %s60_s24, [#allocation8], %s1368_s2, %s1368_s2, %s1369_s20  }
  0x2e   :  { %1357 = dma.done.wait [#allocation3], 512  }
  0x2f   :  { %1358 = vsyncadd [#allocation3], 4294966784 }
  0x30   :  { %1359 = dma.done.wait [#allocation5], 160  }
  0x31   :  { %1360 = vsyncadd [#allocation5], 4294967136 }
  0x32   :  { %1361 = dma.done.wait [#allocation8], 32  }
  0x33   :  { %1362 = vsyncadd [#allocation8], 4294967264  ;;  %vm85_vm0 = vcmask 64512   ;;  %v84_v0 = vld [vmem:[#allocation4] sm:$0xff]  ;;  %v83_v2 = vld [vmem:[%s1560_s1 + $0x8] sm:$0xff]  ;;  %vm176_vm1 = vcmask 130048  }
  0x34   :  { %v82_v1 = vld [vmem:[%s1560_s1] sm:$0xff]  ;;  %1163 = vmatprep.subr.mxu0 %v84_v0  ;;  %s1371_s5 = smov 96   ;;  %v168_v6 = vld [vmem:[#allocation2 + $0x8] sm:$0xff]  ;;  %v263_v7 = vld [vmem:[%s1563_s4 + $0x18] sm:$0xff]  ;;  %vm271_vm2 = vcmask 261120   ;;  %s1372_s15 = smov 64  }
  0x35   :  { %1165 = vmatprep.mubr.msk.f32.mxu0 %vm85_vm0, %v82_v1  ;;  %1164 = vmatpush3.msra.mxu0 %v84_v0  ;;  %v1436_v3 = vld [vmem:[#allocation2] sm:$0xff]  ;;  %v262_v8 = vld [vmem:[%s1563_s4 + $0x10] sm:$0xff]  ;;  %v261_v9 = vld [vmem:[%s1563_s4 + $0x8] sm:$0xff]  ;;  %vm1053_vm3 = vcmask 31744  }
  0x36   :  { %1166 = vmatmul.mubr.msk.f32.vlgmr.msra.gmra.mxu0 %vm85_vm0, %v83_v2  ;;  %v260_v10 = vld [vmem:[%s1563_s4] sm:$0xff]  ;;  %v1087_v11 = vld [vmem:[#allocation6] ss:$0 sm:$0xff]  ;;  %v1090_v18 = vld [vmem:[#allocation7] ss:$0 sm:$0xff] }
  0x37   :  { %1172 = vmatprep.mubr.msk.f32.mxu0 %vm176_vm1, %v1436_v3  ;;  %v1465_v27 = vld [vmem:[#allocation2 + $0x10] sm:$0xff]  ;;  %v1467_v28 = vld [vmem:[#allocation2 + $0x18] sm:$0xff]  ;;  %v1099_v51 = vld [vmem:[#allocation6 + $0x1] ss:$0 sm:$0xff] }
  0x38   :  { %v1105_v50 = vld [vmem:[%s1563_s4 + $0x38] sm:$0xff]  ;;  %v1104_v59 = vld [vmem:[%s1563_s4 + $0x30] sm:$0xff]  ;;  %v1103_v60 = vld [vmem:[%s1563_s4 + $0x28] sm:$0xff] }
  0x39   :  { %v1102_v62 = vld [vmem:[%s1563_s4 + $0x20] sm:$0xff]  ;;  %v1106_v2 = vld [vmem:[#allocation7 + $0x1] ss:$0 sm:$0xff] }
  0xf6   :  { %v1167_v4 = vpop.f32.mrf.mxu0 }
  0xf7   :  { %574 = vrot.lane.b32.xlu1 %v1167_v4, %s1371_s5  ;;  %1168 = vmatprep.subr.mxu0 %v1167_v4 }
  0xf8   :  { %v158_v5 = vpop.f32.mrf.mxu0  ;;  %1169 = vmatpush3.msra.mxu0 %v1167_v4 }
  0xf9   :  { %1170 = vmatprep.subr.mxu0 %v158_v5 }
  0xfa   :  { %1171 = vmatpush3.msra.mxu0 %v158_v5 }
  0xfb   :  { %572 = vrot.lane.b32.xlu1 %v158_v5, %s1371_s5  ;;  %1173 = vmatmul.mubr.msk.f32.vlgmr.msra.gmra.mxu0 %vm176_vm1, %v168_v6 }
  0xfc   :  { %1175 = vmatprep.subr.mxu0 %v263_v7 }
  0xfd   :  { %1176 = vmatpush3.msra.mxu0 %v263_v7 }
  0xfe   :  { %1177 = vmatprep.subr.mxu0 %v262_v8 }
  0xff   :  { %1178 = vmatpush3.msra.mxu0 %v262_v8 }
 0x100   :  { %1179 = vmatprep.subr.mxu0 %v261_v9 }
 0x101   :  { %1180 = vmatpush3.msra.mxu0 %v261_v9 }
 0x102   :  { %1181 = vmatprep.subr.mxu0 %v260_v10 }
 0x103   :  { %1182 = vmatpush3.msra.mxu0 %v260_v10 }
 0x169   :  { %v575_v24 = vpop.permute.xlu1 %574 }
 0x16d   :  { %v573_v26 = vpop.permute.xlu1 %572 }
 0x1bb   :  { %v1174_v12 = vpop.f32.mrf.mxu0 }
 0x1bc   :  { %v255_v13 = vadd.f32 %v1174_v12, %v1087_v11 }
 0x1bd   :  { %v249_v14 = vpop.f32.mrf.mxu0 }
 0x1be   :  { %v250_v15 = vadd.f32 %v1087_v11, %v249_v14  ;;  %v259_v17 = vmax.f32 %v255_v13, 0.0 }
 0x1c0   :  { %v258_v16 = vmax.f32 %v250_v15, 0.0 }
 0x1c2   :  { %1183 = vmatprep.mubr.msk.f32.mxu0 %vm271_vm2, %v258_v16 }
 0x1c3   :  { %1184 = vmatmul.mubr.msk.f32.vlgmr.msra.gmra.mxu0 %vm271_vm2, %v259_v17 }
 0x283   :  { %v1185_v19 = vpop.f32.mrf.mxu0 }
 0x284   :  { %v350_v20 = vadd.f32 %v1185_v19, %v1090_v18 }
 0x285   :  { %v344_v21 = vpop.f32.mrf.mxu0 }
 0x286   :  { %v345_v22 = vadd.f32 %v1090_v18, %v344_v21  ;;  %357 = vrot.lane.b32.xlu0 %v350_v20, %s1371_s5 }
 0x288   :  { %1190 = vmatprep.mubr.msk.f32.mxu1 %vm271_vm2, %v345_v22 }
 0x28a   :  { %355 = vrot.lane.b32.xlu0 %v345_v22, %s1371_s5 }
 0x2f8   :  { %v358_v23 = vpop.permute.xlu0 %357 }
 0x2f9   :  { %1186 = vmatprep.subr.msk.mxu1 %vm271_vm2, %v358_v23 }
 0x2fa   :  { %1187 = vmatpush3.xpose.msk.msra.mxu1 %vm271_vm2, %v358_v23 }
 0x2fc   :  { %v356_v25 = vpop.permute.xlu0 %355 }
 0x2fd   :  { %1188 = vmatprep.subr.msk.mxu1 %vm271_vm2, %v356_v25 }
 0x2fe   :  { %1189 = vmatpush3.xpose.msk.msra.mxu1 %vm271_vm2, %v356_v25 }
 0x2ff   :  { %1200 = vmatprep.subr.mxu1 %v575_v24 }
 0x301   :  { %1191 = vmatmul.mubr.msk.f32.vlgmr.msra.gmra.mxu1 %vm271_vm2, %v350_v20 }
 0x302   :  { %1201 = vmatpush3.msra.mxu1 %v575_v24  ;;  %1204 = vmatprep.mubr.msk.f32.mxu1 %vm176_vm1, %v1465_v27 }
 0x303   :  { %1202 = vmatprep.subr.mxu1 %v573_v26 }
 0x304   :  { %1203 = vmatpush3.msra.mxu1 %v573_v26 }
 0x305   :  { %1205 = vmatmul.mubr.msk.f32.vlgmr.msra.gmra.mxu1 %vm176_vm1, %v1467_v28 }
 0x3c1   :  { %v1192_v29 = vpop.f32.mrf.mxu1 }
 0x3c2   :  { %v443_v30 = vmul.f32 %v1192_v29, %v168_v6 }
 0x3c3   :  { %v433_v31 = vpop.f32.mrf.mxu1 }
 0x3c4   :  { %v442_v32 = vmul.f32 %v433_v31, %v1436_v3  ;;  %v447_v33 = vsel %vm176_vm1, %v443_v30, -inf }
 0x3c5   :  { %448 = vmax.xlane.f32.xlu1 %v447_v33  ;;  %v1206_v49 = vpop.f32.mrf.mxu1  ;;  %v964_v33 = vld [vmem:[%s1565_s6 + $0x18] sm:$0xff] }
 0x3c6   :  { %v444_v34 = vsel %vm176_vm1, %v442_v32, -inf  ;;  %v656_v61 = vadd.f32 %v1206_v49, %v1099_v51 }
 0x3c7   :  { %445 = vmax.xlane.f32.xlu0 %v444_v34  ;;  %v650_v52 = vpop.f32.mrf.mxu1  ;;  %v963_v34 = vld [vmem:[%s1565_s6 + $0x10] sm:$0xff] }
 0x3c8   :  { %v651_v53 = vadd.f32 %v1099_v51, %v650_v52  ;;  %v660_v63 = vmax.f32 %v656_v61, 0.0 }
 0x3ca   :  { %v659_v57 = vmax.f32 %v651_v53, 0.0 }
 0x3d6   :  { %468 = vrot.lane.b32.xlu1 %v350_v20, %s1372_s15 }
 0x44e   :  { %v449_v35 = vpop.xlane.xlu1 %448 }
 0x44f   :  { %v451_v36 = vsub.f32 %v443_v30, %v449_v35  ;;  %v962_v35 = vld [vmem:[%s1565_s6 + $0x8] sm:$0xff] }
 0x450   :  { %v446_v37 = vpop.xlane.xlu0 %445 }
 0x451   :  { %v454_v38 = vmul.f32 1.442695, %v451_v36  ;;  %v450_v39 = vsub.f32 %v442_v32, %v446_v37  ;;  %v961_v36 = vld [vmem:[%s1565_s6] sm:$0xff] }
 0x452   :  { %v1477_v40 = vpop.permute.xlu1 %468 }
 0x453   :  { %1253 = vpow2.f32 %v454_v38  ;;  %v452_v41 = vmul.f32 1.442695, %v450_v39  ;;  %1193 = vmatprep.subr.mxu0 %v1477_v40 }
 0x454   :  { %1194 = vmatpush3.msra.mxu0 %v1477_v40 }
 0x455   :  { %1255 = vpow2.f32 %v452_v41 }
 0x460   :  { %v1254_v42 = vpop.eup %1253 }
 0x461   :  { %v459_v43 = vsel %vm176_vm1, %v1254_v42, 0.0 }
 0x462   :  { %v1256_v44 = vpop.eup %1255  ;;  %460 = vadd.xlane.f32.xlu0 %v459_v43 }
 0x463   :  { %v456_v45 = vsel %vm176_vm1, %v1256_v44, 0.0 }
 0x466   :  { %457 = vadd.xlane.f32.xlu0 %v456_v45 }
 0x47c   :  { %466 = vrot.lane.b32.xlu0 %v345_v22, %s1372_s15 }
 0x4eb   :  { %v461_v46 = vpop.xlane.xlu0 %460 }
 0x4ec   :  { %1257 = vrcp.f32 %v461_v46 }
 0x4ef   :  { %v458_v47 = vpop.xlane.xlu0 %457 }
 0x4f0   :  { %1259 = vrcp.f32 %v458_v47 }
 0x4f3   :  { %v1484_v48 = vpop.permute.xlu0 %466 }
 0x4f4   :  { %1195 = vmatprep.subr.mxu0 %v1484_v48 }
 0x4f5   :  { %1196 = vmatpush3.msra.mxu0 %v1484_v48 }
 0x4f6   :  { %1207 = vmatprep.subr.mxu0 %v1105_v50 }
 0x4f9   :  { %v1258_v54 = vpop.eup %1257 }
 0x4fa   :  { %v465_v58 = vmul.f32 %v1258_v54, %v1254_v42 }
 0x4fd   :  { %v1260_v55 = vpop.eup %1259 }
 0x4fe   :  { %v463_v56 = vmul.f32 %v1260_v55, %v1256_v44 }
 0x500   :  { %1197 = vmatprep.mubr.msk.f32.mxu0 %vm176_vm1, %v463_v56 }
 0x501   :  { %1198 = vmatmul.mubr.msk.f32.vlgmr.msra.gmra.mxu0 %vm176_vm1, %v465_v58 }
 0x502   :  { %1208 = vmatpush3.msra.mxu0 %v1105_v50  ;;  %1215 = vmatprep.mubr.msk.f32.mxu0 %vm271_vm2, %v659_v57 }
 0x503   :  { %1209 = vmatprep.subr.mxu0 %v1104_v59 }
 0x504   :  { %1210 = vmatpush3.msra.mxu0 %v1104_v59 }
 0x505   :  { %1211 = vmatprep.subr.mxu0 %v1103_v60 }
 0x506   :  { %1212 = vmatpush3.msra.mxu0 %v1103_v60 }
 0x507   :  { %1213 = vmatprep.subr.mxu0 %v1102_v62 }
 0x508   :  { %1214 = vmatpush3.msra.mxu0 %v1102_v62 }
 0x509   :  { %1216 = vmatmul.mubr.msk.f32.vlgmr.msra.gmra.mxu0 %vm271_vm2, %v660_v63 }
 0x5c1   :  { %v1504_v0 = vpop.f32.mrf.mxu0 }
 0x5c2   :  { %v550_v38 = vadd.f32 %v1504_v0, %v1477_v40  ;;  %v1115_v40 = vld [vmem:[%s1566_s7] ss:$0 sm:$0xff] }
 0x5c3   :  { %v1506_v1 = vpop.f32.mrf.mxu0 }
 0x5c4   :  { %v545_v37 = vadd.f32 %v1506_v1, %v1484_v48  ;;  %v554_v46 = vmul.f32 0.5, %v550_v38 }
 0x5c6   :  { %v553_v43 = vmul.f32 0.5, %v545_v37  ;;  %v556_v52 = vmax.f32 %v554_v46, 0.0 }
 0x5c8   :  { %v555_v50 = vmax.f32 %v553_v43, 0.0 }
 0x5c9   :  { %v1217_v3 = vpop.f32.mrf.mxu0 }
 0x5ca   :  { %v752_v4 = vadd.f32 %v1217_v3, %v1106_v2 }
 0x5cb   :  { %v746_v5 = vpop.f32.mrf.mxu0 }
 0x5cc   :  { %v747_v6 = vadd.f32 %v1106_v2, %v746_v5  ;;  %759 = vrot.lane.b32.xlu1 %v752_v4, %s1371_s5 }
 0x5ce   :  { %1222 = vmatprep.mubr.msk.f32.mxu1 %vm271_vm2, %v747_v6 }
 0x5d0   :  { %757 = vrot.lane.b32.xlu1 %v747_v6, %s1371_s5 }
 0x63e   :  { %v760_v7 = vpop.permute.xlu1 %759 }
 0x63f   :  { %1218 = vmatprep.subr.msk.mxu1 %vm271_vm2, %v760_v7 }
 0x640   :  { %1219 = vmatpush3.xpose.msk.msra.mxu1 %vm271_vm2, %v760_v7 }
 0x642   :  { %v758_v8 = vpop.permute.xlu1 %757 }
 0x643   :  { %1220 = vmatprep.subr.msk.mxu1 %vm271_vm2, %v758_v8 }
 0x644   :  { %1221 = vmatpush3.xpose.msk.msra.mxu1 %vm271_vm2, %v758_v8 }
 0x645   :  { %1232 = vmatprep.subr.mxu1 %v964_v33 }
 0x647   :  { %1223 = vmatmul.mubr.msk.f32.vlgmr.msra.gmra.mxu1 %vm271_vm2, %v752_v4 }
 0x648   :  { %1233 = vmatpush3.msra.mxu1 %v964_v33 }
 0x649   :  { %1234 = vmatprep.subr.mxu1 %v963_v34 }
 0x64a   :  { %1235 = vmatpush3.msra.mxu1 %v963_v34 }
 0x64b   :  { %1236 = vmatprep.subr.mxu1 %v962_v35 }
 0x64c   :  { %1237 = vmatpush3.msra.mxu1 %v962_v35 }
 0x64d   :  { %1238 = vmatprep.subr.mxu1 %v961_v36 }
 0x64e   :  { %1239 = vmatpush3.msra.mxu1 %v961_v36 }
 0x707   :  { %v1224_v9 = vpop.f32.mrf.mxu1 }
 0x708   :  { %v845_v10 = vmul.f32 %v1224_v9, %v1467_v28 }
 0x709   :  { %v835_v11 = vpop.f32.mrf.mxu1 }
 0x70a   :  { %v844_v12 = vmul.f32 %v835_v11, %v1465_v27  ;;  %v849_v13 = vsel %vm176_vm1, %v845_v10, -inf }
 0x70b   :  { %850 = vmax.xlane.f32.xlu1 %v849_v13 }
 0x70c   :  { %v846_v14 = vsel %vm176_vm1, %v844_v12, -inf }
 0x70d   :  { %847 = vmax.xlane.f32.xlu0 %v846_v14 }
 0x71c   :  { %870 = vrot.lane.b32.xlu1 %v752_v4, %s1372_s15 }
 0x794   :  { %v851_v15 = vpop.xlane.xlu1 %850 }
 0x795   :  { %v853_v16 = vsub.f32 %v845_v10, %v851_v15 }
 0x796   :  { %v848_v17 = vpop.xlane.xlu0 %847 }
 0x797   :  { %v856_v18 = vmul.f32 1.442695, %v853_v16  ;;  %v852_v19 = vsub.f32 %v844_v12, %v848_v17 }
 0x798   :  { %v871_v20 = vpop.permute.xlu1 %870 }
 0x799   :  { %1261 = vpow2.f32 %v856_v18  ;;  %v854_v21 = vmul.f32 1.442695, %v852_v19  ;;  %1225 = vmatprep.subr.mxu0 %v871_v20 }
 0x79a   :  { %1226 = vmatpush3.msra.mxu0 %v871_v20 }
 0x79b   :  { %1263 = vpow2.f32 %v854_v21 }
 0x7a6   :  { %v1262_v22 = vpop.eup %1261 }
 0x7a7   :  { %v861_v23 = vsel %vm176_vm1, %v1262_v22, 0.0 }
 0x7a8   :  { %v1264_v24 = vpop.eup %1263  ;;  %862 = vadd.xlane.f32.xlu0 %v861_v23 }
 0x7a9   :  { %v858_v25 = vsel %vm176_vm1, %v1264_v24, 0.0 }
 0x7ac   :  { %859 = vadd.xlane.f32.xlu0 %v858_v25 }
 0x7c2   :  { %868 = vrot.lane.b32.xlu0 %v747_v6, %s1372_s15 }
 0x831   :  { %v863_v26 = vpop.xlane.xlu0 %862 }
 0x832   :  { %1265 = vrcp.f32 %v863_v26 }
 0x835   :  { %v860_v27 = vpop.xlane.xlu0 %859 }
 0x836   :  { %1267 = vrcp.f32 %v860_v27 }
 0x839   :  { %v869_v28 = vpop.permute.xlu0 %868 }
 0x83a   :  { %1227 = vmatprep.subr.mxu0 %v869_v28 }
 0x83b   :  { %1228 = vmatpush3.msra.mxu0 %v869_v28 }
 0x83f   :  { %v1266_v29 = vpop.eup %1265 }
 0x840   :  { %v867_v32 = vmul.f32 %v1266_v29, %v1262_v22 }
 0x843   :  { %v1268_v30 = vpop.eup %1267 }
 0x844   :  { %v865_v31 = vmul.f32 %v1268_v30, %v1264_v24 }
 0x846   :  { %1229 = vmatprep.mubr.msk.f32.mxu0 %vm176_vm1, %v865_v31 }
 0x847   :  { %1230 = vmatmul.mubr.msk.f32.vlgmr.msra.gmra.mxu0 %vm176_vm1, %v867_v32 }
 0x907   :  { %v1231_v39 = vpop.f32.mrf.mxu0 }
 0x908   :  { %v952_v41 = vadd.f32 %v1231_v39, %v871_v20 }
 0x909   :  { %v946_v42 = vpop.f32.mrf.mxu0 }
 0x90a   :  { %v956_v44 = vmul.f32 0.5, %v952_v41  ;;  %v947_v45 = vadd.f32 %v946_v42, %v869_v28 }
 0x90c   :  { %v955_v47 = vmul.f32 0.5, %v947_v45  ;;  %v958_v49 = vmax.f32 %v956_v44, 0.0 }
 0x90e   :  { %v957_v51 = vmax.f32 %v955_v47, 0.0  ;;  %v960_v54 = vadd.f32 %v958_v49, %v556_v52 }
 0x910   :  { %v959_v53 = vadd.f32 %v957_v51, %v555_v50 }
 0x912   :  { %1240 = vmatprep.mubr.msk.f32.mxu1 %vm271_vm2, %v959_v53 }
 0x913   :  { %1241 = vmatmul.mubr.msk.f32.vlgmr.msra.gmra.mxu1 %vm271_vm2, %v960_v54 }
 0x9d3   :  { %v1242_v48 = vpop.f32.mrf.mxu1 }
 0x9d4   :  { %v1050_v55 = vadd.f32 %v1242_v48, %v1115_v40 }
 0x9d5   :  { %v1044_v56 = vpop.f32.mrf.mxu1 }
 0x9d6   :  { %v1045_v57 = vadd.f32 %v1115_v40, %v1044_v56  ;;  %v1057_v58 = vsel %vm1053_vm3, %v1050_v55, -inf }
 0x9d7   :  { %1058 = vmax.xlane.f32.xlu0 %v1057_v58 }
 0x9d8   :  { %v1054_v59 = vsel %vm1053_vm3, %v1045_v57, -inf }
 0x9d9   :  { %1055 = vmax.xlane.f32.xlu1 %v1054_v59 }
 0xa60   :  { %v1059_v60 = vpop.xlane.xlu0 %1058 }
 0xa61   :  { %v1061_v61 = vsub.f32 %v1050_v55, %v1059_v60 }
 0xa62   :  { %v1056_v62 = vpop.xlane.xlu1 %1055 }
 0xa63   :  { %v1064_v63 = vmul.f32 1.442695, %v1061_v61  ;;  %v1060_v0 = vsub.f32 %v1045_v57, %v1056_v62 }
 0xa65   :  { %1269 = vpow2.f32 %v1064_v63  ;;  %v1062_v1 = vmul.f32 1.442695, %v1060_v0 }
 0xa67   :  { %1271 = vpow2.f32 %v1062_v1 }
 0xa72   :  { %v1270_v2 = vpop.eup %1269 }
 0xa73   :  { %v1069_v3 = vsel %vm1053_vm3, %v1270_v2, 0.0 }
 0xa74   :  { %v1272_v4 = vpop.eup %1271  ;;  %1070 = vadd.xlane.f32.xlu0 %v1069_v3 }
 0xa75   :  { %v1066_v5 = vsel %vm1053_vm3, %v1272_v4, 0.0 }
 0xa76   :  { %1067 = vadd.xlane.f32.xlu1 %v1066_v5 }
 0xafd   :  { %v1071_v6 = vpop.xlane.xlu0 %1070 }
 0xafe   :  { %1273 = vrcp.f32 %v1071_v6 }
 0xaff   :  { %v1068_v7 = vpop.xlane.xlu1 %1067 }
 0xb00   :  { %1275 = vrcp.f32 %v1068_v7 }
 0xb0b   :  { %v1274_v8 = vpop.eup %1273 }
 0xb0c   :  { %v1075_v9 = vmul.f32 %v1274_v8, %v1270_v2 }
 0xb0d   :  { %v1276_v10 = vpop.eup %1275 }
 0xb0e   :  { %1077 = vst.msk [vmem:[%s1567_s8 + $0x8] sm:$0xff] %vm1053_vm3, %v1075_v9  ;;  %v1073_v11 = vmul.f32 %v1276_v10, %v1272_v4 }
 0xb10   :  { %1076 = vst.msk [vmem:[%s1567_s8] sm:$0xff] %vm1053_vm3, %v1073_v11 }
 0xb11   :  { %1082 = vsyncpa [#allocation3], 1 }
 0xb12   :  { %1083 = vsyncpa [#allocation5], 1 }
 0xb13   :  { %1084 = vsyncpa [#allocation8], 1 }

</bundles_post_ra>
